<compile_context>
chip_gen: v7x
topology: tpu7x:2x2x1
jax: 0.10.0
libtpu: 0.0.40
codegen_flags: <defaults>
</compile_context>

<pallas_src>
import jax
import jax.numpy as jnp
from jax.experimental import pallas as pl
from jax.experimental.pallas import tpu as pltpu

HIDDEN_PAD = 128   # hidden dim padded 32 -> 128 (full MXU lane width, native (8,128) tiles)
OUT_PAD = 128      # output dim padded 2 -> 128 (lane-dense, unmasked output stores)


def dqn_kernel(x_ref, w1_ref, b1_ref, w2_ref, b2_ref, w3_ref, b3_ref, o_ref):
    # x: (TB, in) bf16; weights: bf16 (in, out); biases: f32 (1, out); accumulate in f32.
    x = x_ref[...]
    h1 = jnp.dot(x, w1_ref[...], preferred_element_type=jnp.float32) + b1_ref[...]
    h1 = jnp.maximum(h1, 0.0).astype(jnp.bfloat16)
    h2 = jnp.dot(h1, w2_ref[...], preferred_element_type=jnp.float32) + b2_ref[...]
    h2 = jnp.maximum(h2, 0.0).astype(jnp.bfloat16)
    o_ref[...] = (jnp.dot(h2, w3_ref[...], preferred_element_type=jnp.float32)
                  + b3_ref[...]).astype(o_ref.dtype)


def _round_up(n, m):
    return ((n + m - 1) // m) * m


def dqn_forward(x, kparams, *, out_features, block_b=256):
    """x: (B, input_size) float; kparams: padded params from pad_params_for_kernel.
    Returns (B, out_features) float32 Q-values."""
    w1, b1 = kparams["w1"], kparams["b1"]
    w2, b2 = kparams["w2"], kparams["b2"]
    w3, b3 = kparams["w3"], kparams["b3"]

    B, in_features = x.shape
    # Batch tile: multiple of 128 when the batch allows it; at tiny batches fall back to
    # the smallest legal tile (multiple of 16 for bf16 sublane packing).
    tb = min(block_b, _round_up(B, 16))
    b_pad = _round_up(B, tb)

    x = x.astype(jnp.bfloat16)
    if b_pad != B:
        x = jnp.pad(x, ((0, b_pad - B), (0, 0)))

    grid = (b_pad // tb,)
    vmem = pltpu.MemorySpace.VMEM

    def resident(a):  # whole-array block, same block every grid step -> stays in VMEM
        return pl.BlockSpec(a.shape, lambda i: (0, 0), memory_space=vmem)

    flops = 2 * b_pad * (in_features * HIDDEN_PAD
                         + HIDDEN_PAD * HIDDEN_PAD
                         + HIDDEN_PAD * OUT_PAD)
    bytes_accessed = (x.size * 2                               # bf16 x
                      + b_pad * OUT_PAD * 4                    # f32 out
                      + (w1.size + w2.size + w3.size) * 2      # bf16 weights
                      + (b1.size + b2.size + b3.size) * 4)     # f32 biases

    out = pl.pallas_call(
        dqn_kernel,
        out_shape=jax.ShapeDtypeStruct((b_pad, OUT_PAD), jnp.float32),
        grid=grid,
        in_specs=[
            pl.BlockSpec((tb, in_features), lambda i: (i, 0), memory_space=vmem),  # x tile
            resident(w1), resident(b1),
            resident(w2), resident(b2),
            resident(w3), resident(b3),
        ],
        out_specs=pl.BlockSpec((tb, OUT_PAD), lambda i: (i, 0), memory_space=vmem),
        compiler_params=pltpu.CompilerParams(dimension_semantics=("parallel",)),
        cost_estimate=pl.CostEstimate(flops=flops, transcendentals=0,
                                      bytes_accessed=bytes_accessed),
    )(x, w1, b1, w2, b2, w3, b3)

    return out[:B, :out_features]


def init_params(key, input_size, hidden, output_size):
    """nn.Linear-style U(-1/sqrt(fan_in), 1/sqrt(fan_in)) init; weights stored (in, out)."""
    ks = jax.random.split(key, 6)

    def linear(kw, kb, fan_in, fan_out):
        bound = 1.0 / float(fan_in) ** 0.5
        # PyTorch weight is (out, in); create then transpose to (in, out) for x @ W.
        w = jax.random.uniform(kw, (fan_out, fan_in), jnp.float32, -bound, bound).T
        b = jax.random.uniform(kb, (1, fan_out), jnp.float32, -bound, bound)
        return w, b

    w1, b1 = linear(ks[0], ks[1], input_size, hidden)
    w2, b2 = linear(ks[2], ks[3], hidden, hidden)
    w3, b3 = linear(ks[4], ks[5], hidden, output_size)
    return {"w1": w1, "b1": b1, "w2": w2, "b2": b2, "w3": w3, "b3": b3}


def pad_params_for_kernel(p):
    """Zero-pad hidden -> 128 and output -> 128; weights to bf16, biases stay f32."""
    def pad_to(a, rows, cols):
        return jnp.pad(a, ((0, rows - a.shape[0]), (0, cols - a.shape[1])))

    in_features = p["w1"].shape[0]
    return {
        "w1": pad_to(p["w1"], in_features, HIDDEN_PAD).astype(jnp.bfloat16),
        "b1": pad_to(p["b1"], 1, HIDDEN_PAD),
        "w2": pad_to(p["w2"], HIDDEN_PAD, HIDDEN_PAD).astype(jnp.bfloat16),
        "b2": pad_to(p["b2"], 1, HIDDEN_PAD),
        "w3": pad_to(p["w3"], HIDDEN_PAD, OUT_PAD).astype(jnp.bfloat16),
        "b3": pad_to(p["b3"], 1, OUT_PAD),
    }


def dqn_reference_f32(x, p):
    h1 = jnp.maximum(x @ p["w1"] + p["b1"], 0.0)
    h2 = jnp.maximum(h1 @ p["w2"] + p["b2"], 0.0)
    return h2 @ p["w3"] + p["b3"]


def dqn_reference_bf16(x, kp, out_features):
    """Same bf16-operand / f32-accumulate path as the kernel (for a tight comparison)."""
    xb = x.astype(jnp.bfloat16)
    h1 = jnp.maximum(jnp.dot(xb, kp["w1"], preferred_element_type=jnp.float32) + kp["b1"], 0.0)
    h2 = jnp.maximum(jnp.dot(h1.astype(jnp.bfloat16), kp["w2"],
                             preferred_element_type=jnp.float32) + kp["b2"], 0.0)
    out = jnp.dot(h2.astype(jnp.bfloat16), kp["w3"],
                  preferred_element_type=jnp.float32) + kp["b3"]
    return out[:, :out_features]


if __name__ == "__main__":
    # CartPole-v1: observation dim = 4, action dim = 2.
    input_size, hidden, output_size = 4, 32, 2
    # Replay-buffer-sized batch; deliberately not a multiple of the batch tile to exercise
    # the ragged-tail padding path. (For per-env-step inference with batch <= ~32, plain
    # XLA-fused jnp is at least as fast; the kernel pays off for batched training.)
    batch = 500

    key = jax.random.PRNGKey(0)
    kx, kp = jax.random.split(key)
    x = jax.random.normal(kx, (batch, input_size), jnp.float32)

    params = init_params(kp, input_size, hidden, output_size)
    kparams = pad_params_for_kernel(params)

    out = dqn_forward(x, kparams, out_features=output_size, block_b=256)
    out = jax.block_until_ready(out)

    assert out.shape == (batch, output_size)
    # Tight check against an identical bf16-operand / f32-accumulate reference path.
    ref_bf16 = dqn_reference_bf16(x, kparams, output_size)
    assert jnp.allclose(out, ref_bf16, atol=1e-3, rtol=1e-3), \
        float(jnp.max(jnp.abs(out - ref_bf16)))
    # Loose check against the pure-f32 reference (difference = bf16 operand rounding only).
    ref_f32 = dqn_reference_f32(x, params)
    assert jnp.allclose(out, ref_f32, atol=5e-2, rtol=5e-2), \
        float(jnp.max(jnp.abs(out - ref_f32)))

    print("KERNEL_OK")
</pallas_src>

<mosaic_0001>
module attributes {stable_mosaic.version = 11 : i64} {
  func.func @dqn_kernel(%arg0: i32, %arg1: memref<256x4xbf16, #tpu.memory_space<vmem>>, %arg2: memref<4x128xbf16, #tpu.memory_space<vmem>>, %arg3: memref<1x128xf32, #tpu.memory_space<vmem>>, %arg4: memref<128x128xbf16, #tpu.memory_space<vmem>>, %arg5: memref<1x128xf32, #tpu.memory_space<vmem>>, %arg6: memref<128x128xbf16, #tpu.memory_space<vmem>>, %arg7: memref<1x128xf32, #tpu.memory_space<vmem>>, %arg8: memref<256x128xf32, #tpu.memory_space<vmem>>) attributes {dimension_semantics = [#tpu.dimension_semantics<parallel>], iteration_bounds = array<i64: 2>, scalar_prefetch = 0 : i64, scratch_operands = 0 : i64, tpu.core_type = #tpu.core_type<tc>, window_params = [{transform_indices = @transform_0, window_bounds = array<i64: 256, 4>}, {pipeline_mode = #tpu.pipeline_mode<synchronous>, transform_indices = @transform_1, window_bounds = array<i64: 4, 128>}, {pipeline_mode = #tpu.pipeline_mode<synchronous>, transform_indices = @transform_2, window_bounds = array<i64: 1, 128>}, {pipeline_mode = #tpu.pipeline_mode<synchronous>, transform_indices = @transform_3, window_bounds = array<i64: 128, 128>}, {pipeline_mode = #tpu.pipeline_mode<synchronous>, transform_indices = @transform_4, window_bounds = array<i64: 1, 128>}, {pipeline_mode = #tpu.pipeline_mode<synchronous>, transform_indices = @transform_5, window_bounds = array<i64: 128, 128>}, {pipeline_mode = #tpu.pipeline_mode<synchronous>, transform_indices = @transform_6, window_bounds = array<i64: 1, 128>}, {transform_indices = @transform_7, window_bounds = array<i64: 256, 128>}]} {
    %c0 = arith.constant 0 : index
    %c0_0 = arith.constant 0 : index
    %0 = vector.load %arg1[%c0, %c0_0] : memref<256x4xbf16, #tpu.memory_space<vmem>>, vector<256x4xbf16>
    %c0_1 = arith.constant 0 : index
    %c0_2 = arith.constant 0 : index
    %1 = vector.load %arg2[%c0_1, %c0_2] : memref<4x128xbf16, #tpu.memory_space<vmem>>, vector<4x128xbf16>
    %cst = arith.constant dense<0.000000e+00> : vector<256x128xf32>
    %2 = tpu.matmul %0, %1, %cst {dimension_numbers = #tpu.dot_dimension_numbers<[1], [0], [0], [1], [0, 0, 1, 1], [], []>} : vector<256x4xbf16>, vector<4x128xbf16>, vector<256x128xf32> -> vector<256x128xf32>
    %c0_3 = arith.constant 0 : index
    %c0_4 = arith.constant 0 : index
    %3 = vector.load %arg3[%c0_3, %c0_4] : memref<1x128xf32, #tpu.memory_space<vmem>>, vector<1x128xf32>
    %4 = vector.broadcast %3 : vector<1x128xf32> to vector<256x128xf32>
    %5 = arith.addf %2, %4 : vector<256x128xf32>
    %cst_5 = arith.constant 0.000000e+00 : f32
    %6 = vector.broadcast %cst_5 : f32 to vector<256x128xf32>
    %7 = arith.maximumf %5, %6 : vector<256x128xf32>
    %8 = arith.truncf %7 : vector<256x128xf32> to vector<256x128xbf16>
    %c0_6 = arith.constant 0 : index
    %c0_7 = arith.constant 0 : index
    %9 = vector.load %arg4[%c0_6, %c0_7] : memref<128x128xbf16, #tpu.memory_space<vmem>>, vector<128x128xbf16>
    %cst_8 = arith.constant dense<0.000000e+00> : vector<256x128xf32>
    %10 = tpu.matmul %8, %9, %cst_8 {dimension_numbers = #tpu.dot_dimension_numbers<[1], [0], [0], [1], [0, 0, 1, 1], [], []>} : vector<256x128xbf16>, vector<128x128xbf16>, vector<256x128xf32> -> vector<256x128xf32>
    %c0_9 = arith.constant 0 : index
    %c0_10 = arith.constant 0 : index
    %11 = vector.load %arg5[%c0_9, %c0_10] : memref<1x128xf32, #tpu.memory_space<vmem>>, vector<1x128xf32>
    %12 = vector.broadcast %11 : vector<1x128xf32> to vector<256x128xf32>
    %13 = arith.addf %10, %12 : vector<256x128xf32>
    %cst_11 = arith.constant 0.000000e+00 : f32
    %14 = vector.broadcast %cst_11 : f32 to vector<256x128xf32>
    %15 = arith.maximumf %13, %14 : vector<256x128xf32>
    %16 = arith.truncf %15 : vector<256x128xf32> to vector<256x128xbf16>
    %c0_12 = arith.constant 0 : index
    %c0_13 = arith.constant 0 : index
    %17 = vector.load %arg6[%c0_12, %c0_13] : memref<128x128xbf16, #tpu.memory_space<vmem>>, vector<128x128xbf16>
    %cst_14 = arith.constant dense<0.000000e+00> : vector<256x128xf32>
    %18 = tpu.matmul %16, %17, %cst_14 {dimension_numbers = #tpu.dot_dimension_numbers<[1], [0], [0], [1], [0, 0, 1, 1], [], []>} : vector<256x128xbf16>, vector<128x128xbf16>, vector<256x128xf32> -> vector<256x128xf32>
    %c0_15 = arith.constant 0 : index
    %c0_16 = arith.constant 0 : index
    %19 = vector.load %arg7[%c0_15, %c0_16] : memref<1x128xf32, #tpu.memory_space<vmem>>, vector<1x128xf32>
    %20 = vector.broadcast %19 : vector<1x128xf32> to vector<256x128xf32>
    %21 = arith.addf %18, %20 : vector<256x128xf32>
    %c0_17 = arith.constant 0 : index
    %c0_18 = arith.constant 0 : index
    %22 = vector.load %arg8[%c0_17, %c0_18] : memref<256x128xf32, #tpu.memory_space<vmem>>, vector<256x128xf32>
    tpu.vector_store %arg8[%c0_17, %c0_18], %21 {strides = array<i32>} : memref<256x128xf32, #tpu.memory_space<vmem>>, vector<256x128xf32>,
    return
  }
  func.func @transform_0(%arg0: i32) -> (i32, i32) {
    %c0_i32 = arith.constant 0 : i32
    %c0_i32_0 = arith.constant 0 : i32
    return %arg0, %c0_i32 : i32, i32
  }
  func.func @transform_1(%arg0: i32) -> (i32, i32) {
    %c0_i32 = arith.constant 0 : i32
    %c0_i32_0 = arith.constant 0 : i32
    %c0_i32_1 = arith.constant 0 : i32
    return %c0_i32, %c0_i32_0 : i32, i32
  }
  func.func @transform_2(%arg0: i32) -> (i32, i32) {
    %c0_i32 = arith.constant 0 : i32
    %c0_i32_0 = arith.constant 0 : i32
    %c0_i32_1 = arith.constant 0 : i32
    return %c0_i32, %c0_i32_0 : i32, i32
  }
  func.func @transform_3(%arg0: i32) -> (i32, i32) {
    %c0_i32 = arith.constant 0 : i32
    %c0_i32_0 = arith.constant 0 : i32
    %c0_i32_1 = arith.constant 0 : i32
    return %c0_i32, %c0_i32_0 : i32, i32
  }
  func.func @transform_4(%arg0: i32) -> (i32, i32) {
    %c0_i32 = arith.constant 0 : i32
    %c0_i32_0 = arith.constant 0 : i32
    %c0_i32_1 = arith.constant 0 : i32
    return %c0_i32, %c0_i32_0 : i32, i32
  }
  func.func @transform_5(%arg0: i32) -> (i32, i32) {
    %c0_i32 = arith.constant 0 : i32
    %c0_i32_0 = arith.constant 0 : i32
    %c0_i32_1 = arith.constant 0 : i32
    return %c0_i32, %c0_i32_0 : i32, i32
  }
  func.func @transform_6(%arg0: i32) -> (i32, i32) {
    %c0_i32 = arith.constant 0 : i32
    %c0_i32_0 = arith.constant 0 : i32
    %c0_i32_1 = arith.constant 0 : i32
    return %c0_i32, %c0_i32_0 : i32, i32
  }
  func.func @transform_7(%arg0: i32) -> (i32, i32) {
    %c0_i32 = arith.constant 0 : i32
    %c0_i32_0 = arith.constant 0 : i32
    return %arg0, %c0_i32 : i32, i32
  }
}

</mosaic_0001>

<bundles_post_ra>
// kernel: tpu_custom_call.1
= control target key start
LH: loop header
LB: loop body
LE: loop exit
PB: predicated region body
PF: predicated region fallthrough
CT: control target
= control target key end

     0   :  { %12 = vsyncpa [#allocation3], 0  ;;  %s2069_s0 = inlined_call_operand.vmem [shape: bf16[512,4], index: 0, kind: input, shape index: {}]   ;;  %s2070_s1 = inlined_call_operand.vmem [shape: bf16[4,128], index: 1, kind: input, shape index: {}]   ;;  %s2071_s2 = inlined_call_operand.vmem [shape: f32[1,128], index: 2, kind: input, shape index: {}]   ;;  %s2072_s3 = inlined_call_operand.vmem [shape: bf16[128,128], index: 3, kind: input, shape index: {}]   ;;  %s2073_s4 = inlined_call_operand.vmem [shape: f32[1,128], index: 4, kind: input, shape index: {}]   ;;  %s2074_s5 = inlined_call_operand.vmem [shape: bf16[128,128], index: 5, kind: input, shape index: {}]   ;;  %s2075_s6 = inlined_call_operand.vmem [shape: f32[1,128], index: 6, kind: input, shape index: {}]   ;;  %s2076_s7 = inlined_call_operand.hbm [shape: f32[512,128], index: 7, kind: output, shape index: {}]  }
   0x1   :  { %14 = vsyncpa [#allocation3 + $0x1], 0  ;;  %s1726_s24 = smov 0   ;;  %s1728_s25 = smov 0  }
   0x2   :  { %s1730_s26 = smov 0   ;;  %s1732_s27 = smov 0  }
   0x3 LB: > { %s1747_s28 = sadd.s32 4294967295, %s1681_s27   ;;  %s1283_s29 = sadd.s32 4294967294, %s1681_s27   ;;  %s1681_s27 = sphi %s1732_s27, %s2082_s27   ;;  %s1677_s26 = sphi %s1730_s26, %s2081_s26   ;;  %s1673_s25 = sphi %s1728_s25, %s2080_s25   ;;  %s1669_s24 = sphi %s1726_s24, %s2079_s24  }
   0x4   : > { %s1751_s30 = sadd.s32 1, %s1681_s27   ;;  %s179_s8 = sadd.s32 1, %s1677_s26 }
   0x5   : > { %s176_s9 = ssub.s32 %s1681_s27, %s1751_s30  ;;  %p189_p0 = scmp.ne.s32.totalorder %s1677_s26, %s1673_s25 }
   0x6   : > { %p177_p1 = scmp.eq.s32.totalorder %s176_s9, 0  ;;  %p190_p2 = scmp.eq.s32.totalorder %s1747_s28, 1 }
   0x7   : > { %p195_p3 = scmp.ne.s32.totalorder %s1673_s25, %s1669_s24  ;;  %p196_p4 = scmp.eq.s32.totalorder %s1283_s29, 1 }
   0x8   : > { %s1762_s10 = scalar_select %p177_p1, %s1677_s26, %s179_s8  }
   0x9   : > { %p1764_p5 = por %p190_p2, %p189_p0  ;;  %p1768_p6 = por %p196_p4, %p195_p3 }
   0xa   : > { %p1286_p7 = scmp.ge.s32.totalorder %s1681_s27, 1  ;;  %p241_p8 = scmp.lt.s32.totalorder %s1681_s27, 3 }
   0xc   : > { %p242_p9 = pnand %p1286_p7, %p241_p8 }
   0xd   : > { %v313_v0 = vld [vmem:[%s2070_s1] sm:$0x3] (!%p242_p9)  ;;  %vm450_vm0 = vcmask (!%p242_p9), 1041408   ;;  %s1288_s15 = sshll.u32 (!%p242_p9), %s1747_s28, 5  ;;  %vm401_vm1 = vcmask (!%p242_p9), 31744   ;;  %v1604_v9 = vld [vmem:[%s2072_s3 + $0x8] sm:$0xff] (!%p242_p9)  }
   0xe   : > { %245 = sbr.rel (%p242_p9) target bundleno = 758 (0x2f6), region = 48  ;;  %v1603_v1 = vld [vmem:[%s2072_s3] sm:$0xff] (!%p242_p9)   ;;  %1544 = vmatprep.subr.msk.bf16.mxu0 (!%p242_p9), %vm450_vm0, %v313_v0  ;;  %v452_v2 = vsel (!%p242_p9), %vm450_vm0, %v313_v0, 0  ;;  %p274_p10 = scmp.lt.s32.totalorder (!%p242_p9), %s1288_s15, 63  ;;  %1545 = vmatprep.subr.msk.bf16.mxu1 (!%p242_p9), %vm450_vm0, %v313_v0  ;;  %v1605_v12 = vld [vmem:[%s2072_s3 + $0x10] sm:$0xff] (!%p242_p9)   ;;  %v1606_v17 = vld [vmem:[%s2072_s3 + $0x18] sm:$0xff] (!%p242_p9)  }
   0xf   : > { %1413 = vmatpush3.bf16.msra.mxu0 (!%p242_p9), %v452_v2  ;;  %1543 = vmatpush3.bf16.msra.mxu1 (!%p242_p9), %v452_v2  ;;  %v1607_v18 = vld [vmem:[%s2072_s3 + $0x20] sm:$0xff] (!%p242_p9)   ;;  %v1608_v22 = vld [vmem:[%s2072_s3 + $0x28] sm:$0xff] (!%p242_p9)   ;;  %v1609_v24 = vld [vmem:[%s2072_s3 + $0x30] sm:$0xff] (!%p242_p9)   ;;  %s270_s14 = sand.u32 (!%p242_p9), 1, %s1673_s25   ;;  %s1346_s19 = sshll.u32 (!%p242_p9), %s1747_s28, 12 }
  0x10   : > { %1446 = vmatprep.subr.bf16.mxu1 (!%p242_p9), %v1603_v1  ;;  %v1610_v25 = vld [vmem:[%s2072_s3 + $0x38] sm:$0xff] (!%p242_p9)   ;;  %v1611_v26 = vld [vmem:[%s2074_s5] sm:$0xff] (!%p242_p9)   ;;  %v1612_v27 = vld [vmem:[%s2074_s5 + $0x8] sm:$0xff] (!%p242_p9)   ;;  %s2018_s29 = scalar_lea.hbm (!%p242_p9), %s2076_s7, %s1346_s19  ;;  %s2028_s28 = scalar_lea.sflag (!%p242_p9), [#allocation3], %s270_s14 }
  0x11   : > { %1494 = vmatprep.subr.bf16.mxu0 (!%p242_p9), %v1611_v26  ;;  %v1613_v28 = vld [vmem:[%s2074_s5 + $0x10] sm:$0xff] (!%p242_p9)   ;;  %v1614_v29 = vld [vmem:[%s2074_s5 + $0x18] sm:$0xff] (!%p242_p9)   ;;  %v1615_v30 = vld [vmem:[%s2074_s5 + $0x20] sm:$0xff] (!%p242_p9)   ;;  %s1683_s8 = smov (!%p242_p9), [#allocation2]  }
  0x12   : > { %v1616_v31 = vld [vmem:[%s2074_s5 + $0x28] sm:$0xff] (!%p242_p9)   ;;  %v1860_v32 = vld [vmem:[%s2071_s2] ss:$0 sm:$0xff] (!%p242_p9)  ;;  %s1623_s9 = sshll.u32 (!%p242_p9), %s1683_s8, 4  ;;  %s1624_s9 = int_to_ptr.vmem [resolvable:$false] %s1623_s9 }
  0x13   : > { %s1625_s13 = scalar_lea.vmem (!%p242_p9), %s1624_s9, 8192 }
  0x15   : > { %s2084_s15 = smov (!%p274_p10, %s1288_s15), 63 }
  0x16   : > { %s1289_s18 = sshll.u32 %s2084_s15, 2  ;;  %s1287_s15 = sshll.u32 %s270_s14, 8 }
  0x17   : > { %s1784_s21 = scalar_lea.vmem %s2069_s0, %s1289_s18  ;;  %s1953_s18 = scalar_lea.vmem [#allocation2], %s1287_s15 }
  0x18   : > { %v1587_v3 = vld [vmem:[%s1784_s21] sm:$0xff]   ;;  %v1588_v4 = vld [vmem:[%s1784_s21 + $0x8] sm:$0xff]   ;;  %v1589_v5 = vld [vmem:[%s1784_s21 + $0x10] sm:$0xff]   ;;  %s1221_s20 = sshll.u32 %s1953_s18, 4  ;;  %s2020_s20 = int_to_ptr.vmem [resolvable:$true] %s1221_s20 }
  0x19   : > { %1414 = vmatprep.mubr.msk.bf16.mxu0 %vm401_vm1, %v1587_v3  ;;  %v1590_v6 = vld [vmem:[%s1784_s21 + $0x18] sm:$0xff]   ;;  %v1591_v7 = vld [vmem:[%s1784_s21 + $0x20] sm:$0xff]   ;;  %v1596_v10 = vld [vmem:[%s1784_s21 + $0x48] sm:$0xff]   ;;  %p1626_p0 = scmp.lt.s32.totalorder %s2020_s20, %s1624_s9 }
  0x1a   : > { %1415 = vmatmul.mubr.msk.bf16.vlgmr.msra.gmra.mrb[0].mxu0 %vm401_vm1, %v1588_v4  ;;  %v1595_v8 = vld [vmem:[%s1784_s21 + $0x40] sm:$0xff]   ;;  %v1597_v11 = vld [vmem:[%s1784_s21 + $0x50] sm:$0xff]   ;;  %v1592_v13 = vld [vmem:[%s1784_s21 + $0x28] sm:$0xff]  }
  0x1b   : > { %1418 = vmatprep.mubr.msk.bf16.mxu0 %vm401_vm1, %v1589_v5  ;;  %1430 = vmatprep.mubr.msk.bf16.mxu1 %vm401_vm1, %v1595_v8  ;;  %v1593_v14 = vld [vmem:[%s1784_s21 + $0x30] sm:$0xff]   ;;  %v1598_v15 = vld [vmem:[%s1784_s21 + $0x58] sm:$0xff]   ;;  %v1599_v16 = vld [vmem:[%s1784_s21 + $0x60] sm:$0xff]  }
  0x1c   : > { %1431 = vmatmul.mubr.msk.bf16.vlgmr.msra.gmra.mrb[0].mxu1 %vm401_vm1, %v1596_v10  ;;  %v1594_v19 = vld [vmem:[%s1784_s21 + $0x38] sm:$0xff]   ;;  %v1600_v20 = vld [vmem:[%s1784_s21 + $0x68] sm:$0xff]   ;;  %v1601_v21 = vld [vmem:[%s1784_s21 + $0x70] sm:$0xff]   ;;  %1495 = vmatpush3.bf16.msra.mxu0 %v1611_v26 }
  0x1d   : > { %1434 = vmatprep.mubr.msk.bf16.mxu1 %vm401_vm1, %v1597_v11  ;;  %1447 = vmatpush3.bf16.msra.mxu1 %v1603_v1  ;;  %v1602_v23 = vld [vmem:[%s1784_s21 + $0x78] sm:$0xff]   ;;  %s1619_s21 = scalar_lea.vmem %s2020_s20, 4096 }
  0x1e   : > { %1448 = vmatprep.subr.bf16.mxu1 %v1604_v9  ;;  %1496 = vmatprep.subr.bf16.mxu0 %v1612_v27  ;;  %p1620_p11 = scmp.ne.s32.totalorder %s2020_s20, %s1619_s21  ;;  %p1627_p1 = scmp.lt.s32.totalorder %s1625_s13, %s1619_s21 }
  0x20   : > { %1497 = vmatpush3.bf16.msra.mxu0 %v1612_v27  ;;  %p1621_p12 = pnand %p1620_p11, %p1764_p5  ;;  %p1628_p2 = por %p1627_p1, %p1626_p0 }
  0x21   : > { %1449 = vmatpush3.bf16.msra.mxu1 %v1604_v9  ;;  %1498 = vmatprep.subr.bf16.mxu0 %v1613_v28 }
  0x22   : > { %1419 = vmatmul.mubr.msk.bf16.gmra.mrb[4].mxu0 %vm401_vm1, %v1590_v6  ;;  %1450 = vmatprep.subr.bf16.mxu1 %v1605_v12  ;;  %p1622_p13 = pneg %p1621_p12 }
  0x23   : > { %1422 = vmatprep.mubr.msk.bf16.mxu0 %vm401_vm1, %v1591_v7 }
  0x24   : > { %1435 = vmatmul.mubr.msk.bf16.gmra.mrb[4].mxu1 %vm401_vm1, %v1598_v15  ;;  %1499 = vmatpush3.bf16.msra.mxu0 %v1613_v28  ;;  %p1629_p3 = pnand %p1628_p2, %p1622_p13 }
  0x25   : > { %1438 = vmatprep.mubr.msk.bf16.mxu1 %vm401_vm1, %v1599_v16  ;;  %1451 = vmatpush3.bf16.msra.mxu1 %v1605_v12 }
  0x26   : > { %1452 = vmatprep.subr.bf16.mxu1 %v1606_v17  ;;  %1500 = vmatprep.subr.bf16.mxu0 %v1614_v29 }
  0x28   : > { %1501 = vmatpush3.bf16.msra.mxu0 %v1614_v29 }
  0x29   : > { %1453 = vmatpush3.bf16.msra.mxu1 %v1606_v17  ;;  %1502 = vmatprep.subr.bf16.mxu0 %v1615_v30 }
  0x2a   : > { %1423 = vmatmul.mubr.msk.bf16.gmra.mrb[8].mxu0 %vm401_vm1, %v1592_v13  ;;  %1454 = vmatprep.subr.bf16.mxu1 %v1607_v18 }
  0x2b   : > { %1426 = vmatprep.mubr.msk.bf16.mxu0 %vm401_vm1, %v1593_v14 }
  0x2c   : > { %1439 = vmatmul.mubr.msk.bf16.gmra.mrb[8].mxu1 %vm401_vm1, %v1600_v20  ;;  %1503 = vmatpush3.bf16.msra.mxu0 %v1615_v30 }
  0x2d   : > { %1442 = vmatprep.mubr.msk.bf16.mxu1 %vm401_vm1, %v1601_v21  ;;  %1455 = vmatpush3.bf16.msra.mxu1 %v1607_v18 }
  0x2e   : > { %1456 = vmatprep.subr.bf16.mxu1 %v1608_v22  ;;  %1504 = vmatprep.subr.bf16.mxu0 %v1616_v31 }
  0x30   : > { %1505 = vmatpush3.bf16.msra.mxu0 %v1616_v31 }
  0x31   : > { %1457 = vmatpush3.bf16.msra.mxu1 %v1608_v22 }
  0x32   : > { %1427 = vmatmul.mubr.msk.bf16.gmra.mrb[12].mxu0 %vm401_vm1, %v1594_v19  ;;  %1458 = vmatprep.subr.bf16.mxu1 %v1609_v24 }
  0x34   : > { %1443 = vmatmul.mubr.msk.bf16.gmra.mrb[12].mxu1 %vm401_vm1, %v1602_v23 }
  0x35   : > { %1459 = vmatpush3.bf16.msra.mxu1 %v1609_v24 }
  0x36   : > { %1460 = vmatprep.subr.bf16.mxu1 %v1610_v25 }
  0x39   : > { %1461 = vmatpush3.bf16.msra.mxu1 %v1610_v25 }
  0xed   : > { %v1416_v33 = vpop.f32.mrb[0].mxu0 }
  0xee   : > { %v497_v34 = vadd.f32 %v1416_v33, %v1860_v32  ;;  %v488_v35 = vpop.f32.mrb[1].mxu0 }
  0xef   : > { %v489_v36 = vadd.f32 %v1860_v32, %v488_v35  ;;  %v1417_v37 = vpop.f32.mrb[2].mxu0  ;;  %v1432_v48 = vpop.f32.mrb[0].mxu1 }
  0xf0   : > { %v500_v38 = vadd.f32 %v1417_v37, %v1860_v32  ;;  %v491_v39 = vpop.f32.mrb[3].mxu0  ;;  %v617_v41 = vmax.f32 %v497_v34, 0.0  ;;  %v561_v51 = vadd.f32 %v1432_v48, %v1860_v32  ;;  %v552_v52 = vpop.f32.mrb[1].mxu1 }
  0xf1   : > { %v492_v40 = vadd.f32 %v1860_v32, %v491_v39  ;;  %v615_v43 = vmax.f32 %v489_v36, 0.0  ;;  %v553_v55 = vadd.f32 %v1860_v32, %v552_v52  ;;  %v1433_v56 = vpop.f32.mrb[2].mxu1 }
  0xf2   : > { %v618_v42 = vmax.f32 %v500_v38, 0.0  ;;  %v633_v59 = vmax.f32 %v561_v51, 0.0  ;;  %v564_v60 = vadd.f32 %v1433_v56, %v1860_v32  ;;  %v555_v61 = vpop.f32.mrb[3].mxu1 }
  0xf3   : > { %v616_v44 = vmax.f32 %v492_v40, 0.0  ;;  %v631_v63 = vmax.f32 %v553_v55, 0.0  ;;  %v556_v0 = vadd.f32 %v1860_v32, %v555_v61 }
  0xf4   : > { %v648_v45 = vpack.c.bf16 %v618_v42, %v617_v41  ;;  %v634_v3 = vmax.f32 %v564_v60, 0.0 }
  0xf5   : > { %v647_v46 = vpack.c.bf16 %v616_v44, %v615_v43  ;;  %v1420_v47 = vpop.f32.mrb[4].mxu0  ;;  %v632_v6 = vmax.f32 %v556_v0, 0.0 }
  0xf6   : > { %v513_v49 = vadd.f32 %v1420_v47, %v1860_v32  ;;  %v504_v50 = vpop.f32.mrb[5].mxu0  ;;  %v1874_v8 = vpack.c.bf16 %v634_v3, %v633_v59 }
  0xf7   : > { %v505_v53 = vadd.f32 %v1860_v32, %v504_v50  ;;  %v1421_v54 = vpop.f32.mrb[6].mxu0  ;;  %1462 = vmatprep.mubr.bf16.mxu1 %v647_v46  ;;  %v1876_v11 = vpack.c.bf16 %v632_v6, %v631_v63  ;;  %v1436_v12 = vpop.f32.mrb[4].mxu1 }
  0xf8   : > { %v516_v57 = vadd.f32 %v1421_v54, %v1860_v32  ;;  %v507_v58 = vpop.f32.mrb[7].mxu0  ;;  %1463 = vmatmul.mubr.bf16.vlgmr.msra.gmra.mrb[16].mxu1 %v648_v45  ;;  %v621_v1 = vmax.f32 %v513_v49, 0.0  ;;  %v577_v15 = vadd.f32 %v1436_v12, %v1860_v32  ;;  %v568_v16 = vpop.f32.mrb[5].mxu1 }
  0xf9   : > { %v508_v62 = vadd.f32 %v1860_v32, %v507_v58  ;;  %v619_v4 = vmax.f32 %v505_v53, 0.0  ;;  %v569_v19 = vadd.f32 %v1860_v32, %v568_v16  ;;  %v1437_v20 = vpop.f32.mrb[6].mxu1 }
  0xfa   : > { %v622_v2 = vmax.f32 %v516_v57, 0.0  ;;  %v637_v23 = vmax.f32 %v577_v15, 0.0  ;;  %v580_v24 = vadd.f32 %v1437_v20, %v1860_v32  ;;  %v571_v25 = vpop.f32.mrb[7].mxu1  ;;  %v1617_v20 = vld [vmem:[%s2074_s5 + $0x30] sm:$0xff]  }
  0xfb   : > { %v620_v5 = vmax.f32 %v508_v62, 0.0  ;;  %v635_v27 = vmax.f32 %v569_v19, 0.0  ;;  %v572_v28 = vadd.f32 %v1860_v32, %v571_v25  ;;  %1506 = vmatprep.subr.bf16.mxu0 %v1617_v20 }
  0xfc   : > { %v650_v7 = vpack.c.bf16 %v622_v2, %v621_v1  ;;  %v638_v31 = vmax.f32 %v580_v24, 0.0  ;;  %1507 = vmatpush3.bf16.msra.mxu0 %v1617_v20 }
  0xfd   : > { %v649_v9 = vpack.c.bf16 %v620_v5, %v619_v4  ;;  %v1424_v10 = vpop.f32.mrb[8].mxu0  ;;  %v636_v35 = vmax.f32 %v572_v28, 0.0 }
  0xfe   : > { %v529_v13 = vadd.f32 %v1424_v10, %v1860_v32  ;;  %v520_v14 = vpop.f32.mrb[9].mxu0  ;;  %v658_v37 = vpack.c.bf16 %v638_v31, %v637_v23 }
  0xff   : > { %v521_v17 = vadd.f32 %v1860_v32, %v520_v14  ;;  %v1425_v18 = vpop.f32.mrb[10].mxu0  ;;  %1466 = vmatprep.mubr.bf16.mxu1 %v649_v9  ;;  %v657_v40 = vpack.c.bf16 %v636_v35, %v635_v27  ;;  %v1440_v41 = vpop.f32.mrb[8].mxu1 }
 0x100   : > { %v532_v21 = vadd.f32 %v1425_v18, %v1860_v32  ;;  %v523_v22 = vpop.f32.mrb[11].mxu0  ;;  %1467 = vmatmul.mubr.bf16.gmra.mrb[20].mxu1 %v650_v7  ;;  %v625_v29 = vmax.f32 %v529_v13, 0.0  ;;  %v593_v44 = vadd.f32 %v1440_v41, %v1860_v32  ;;  %v584_v45 = vpop.f32.mrb[9].mxu1 }
 0x101   : > { %v524_v26 = vadd.f32 %v1860_v32, %v523_v22  ;;  %v623_v33 = vmax.f32 %v521_v17, 0.0  ;;  %v585_v48 = vadd.f32 %v1860_v32, %v584_v45  ;;  %v1441_v49 = vpop.f32.mrb[10].mxu1 }
 0x102   : > { %v626_v30 = vmax.f32 %v532_v21, 0.0  ;;  %v641_v52 = vmax.f32 %v593_v44, 0.0  ;;  %v596_v53 = vadd.f32 %v1441_v49, %v1860_v32  ;;  %v587_v54 = vpop.f32.mrb[11].mxu1 }
 0x103   : > { %v624_v34 = vmax.f32 %v524_v26, 0.0  ;;  %v639_v56 = vmax.f32 %v585_v48, 0.0  ;;  %v588_v57 = vadd.f32 %v1860_v32, %v587_v54 }
 0x104   : > { %v652_v36 = vpack.c.bf16 %v626_v30, %v625_v29  ;;  %v642_v60 = vmax.f32 %v596_v53, 0.0 }
 0x105   : > { %v651_v38 = vpack.c.bf16 %v624_v34, %v623_v33  ;;  %v1428_v39 = vpop.f32.mrb[12].mxu0  ;;  %v640_v63 = vmax.f32 %v588_v57, 0.0 }
 0x106   : > { %v545_v42 = vadd.f32 %v1428_v39, %v1860_v32  ;;  %v536_v43 = vpop.f32.mrb[13].mxu0  ;;  %v660_v1 = vpack.c.bf16 %v642_v60, %v641_v52 }
 0x107   : > { %v537_v46 = vadd.f32 %v1860_v32, %v536_v43  ;;  %v1429_v47 = vpop.f32.mrb[14].mxu0  ;;  %1470 = vmatprep.mubr.bf16.mxu1 %v651_v38  ;;  %v659_v3 = vpack.c.bf16 %v640_v63, %v639_v56  ;;  %v1444_v4 = vpop.f32.mrb[12].mxu1 }
 0x108   : > { %v548_v50 = vadd.f32 %v1429_v47, %v1860_v32  ;;  %v539_v51 = vpop.f32.mrb[15].mxu0  ;;  %1471 = vmatmul.mubr.bf16.gmra.mrb[24].mxu1 %v652_v36  ;;  %v629_v58 = vmax.f32 %v545_v42, 0.0  ;;  %v609_v5 = vadd.f32 %v1444_v4, %v1860_v32  ;;  %v600_v6 = vpop.f32.mrb[13].mxu1 }
 0x109   : > { %v540_v55 = vadd.f32 %v1860_v32, %v539_v51  ;;  %v627_v61 = vmax.f32 %v537_v46, 0.0  ;;  %v601_v7 = vadd.f32 %v1860_v32, %v600_v6  ;;  %v1445_v9 = vpop.f32.mrb[14].mxu1 }
 0x10a   : > { %v630_v59 = vmax.f32 %v548_v50, 0.0  ;;  %v645_v10 = vmax.f32 %v609_v5, 0.0  ;;  %v612_v12 = vadd.f32 %v1445_v9, %v1860_v32  ;;  %v603_v13 = vpop.f32.mrb[15].mxu1 }
 0x10b   : > { %v628_v62 = vmax.f32 %v540_v55, 0.0  ;;  %v643_v14 = vmax.f32 %v601_v7, 0.0  ;;  %v604_v15 = vadd.f32 %v1860_v32, %v603_v13  ;;  %v1618_v32 = vld [vmem:[%s2074_s5 + $0x38] sm:$0xff]  }
 0x10c   : > { %v654_v0 = vpack.c.bf16 %v630_v59, %v629_v58  ;;  %v646_v16 = vmax.f32 %v612_v12, 0.0  ;;  %1508 = vmatprep.subr.bf16.mxu0 %v1618_v32 }
 0x10d   : > { %v653_v2 = vpack.c.bf16 %v628_v62, %v627_v61  ;;  %v644_v17 = vmax.f32 %v604_v15, 0.0  ;;  %1509 = vmatpush3.bf16.msra.mxu0 %v1618_v32 }
 0x10e   : > { %v662_v18 = vpack.c.bf16 %v646_v16, %v645_v10 }
 0x10f   : > { %1474 = vmatprep.mubr.bf16.mxu1 %v653_v2  ;;  %v661_v19 = vpack.c.bf16 %v644_v17, %v643_v14 }
 0x110   : > { %1475 = vmatmul.mubr.bf16.gmra.mrb[28].mxu1 %v654_v0 }
 0x111   : > { %1478 = vmatprep.mubr.bf16.mxu1 %v1876_v11 }
 0x118   : > { %1479 = vmatmul.mubr.bf16.gmra.mrb[32].mxu1 %v1874_v8  ;;  %v1909_v8 = vld [vmem:[%s2073_s4] ss:$0 sm:$0xff] }
 0x119   : > { %1482 = vmatprep.mubr.bf16.mxu1 %v657_v40 }
 0x120   : > { %1483 = vmatmul.mubr.bf16.gmra.mrb[36].mxu1 %v658_v37 }
 0x121   : > { %1486 = vmatprep.mubr.bf16.mxu1 %v659_v3 }
 0x128   : > { %1487 = vmatmul.mubr.bf16.gmra.mrb[40].mxu1 %v660_v1 }
 0x129   : > { %1490 = vmatprep.mubr.bf16.mxu1 %v661_v19 }
 0x130   : > { %1491 = vmatmul.mubr.bf16.gmra.mrb[44].mxu1 %v662_v18 }
 0x1cb   : > { %v1464_v11 = vpop.f32.mrb[16].mxu1 }
 0x1cc   : > { %v777_v21 = vadd.f32 %v1464_v11, %v1909_v8  ;;  %v768_v22 = vpop.f32.mrb[17].mxu1 }
 0x1cd   : > { %v769_v23 = vadd.f32 %v1909_v8, %v768_v22  ;;  %v1465_v24 = vpop.f32.mrb[18].mxu1 }
 0x1ce   : > { %v780_v25 = vadd.f32 %v1465_v24, %v1909_v8  ;;  %v771_v26 = vpop.f32.mrb[19].mxu1  ;;  %v897_v28 = vmax.f32 %v777_v21, 0.0 }
 0x1cf   : > { %v772_v27 = vadd.f32 %v1909_v8, %v771_v26  ;;  %v895_v30 = vmax.f32 %v769_v23, 0.0 }
 0x1d0   : > { %v898_v29 = vmax.f32 %v780_v25, 0.0 }
 0x1d1   : > { %v896_v31 = vmax.f32 %v772_v27, 0.0 }
 0x1d2   : > { %v928_v33 = vpack.c.bf16 %v898_v29, %v897_v28 }
 0x1d3   : > { %v927_v34 = vpack.c.bf16 %v896_v31, %v895_v30  ;;  %v1468_v35 = vpop.f32.mrb[20].mxu1 }
 0x1d4   : > { %v793_v36 = vadd.f32 %v1468_v35, %v1909_v8  ;;  %v784_v37 = vpop.f32.mrb[21].mxu1 }
 0x1d5   : > { %v785_v38 = vadd.f32 %v1909_v8, %v784_v37  ;;  %v1469_v39 = vpop.f32.mrb[22].mxu1  ;;  %1510 = vmatprep.mubr.bf16.mxu0 %v927_v34 }
 0x1d6   : > { %v796_v40 = vadd.f32 %v1469_v39, %v1909_v8  ;;  %v787_v41 = vpop.f32.mrb[23].mxu1  ;;  %1511 = vmatmul.mubr.bf16.vlgmr.msra.gmra.mrb[16].mxu0 %v928_v33  ;;  %v901_v43 = vmax.f32 %v793_v36, 0.0 }
 0x1d7   : > { %v788_v42 = vadd.f32 %v1909_v8, %v787_v41  ;;  %v899_v45 = vmax.f32 %v785_v38, 0.0 }
 0x1d8   : > { %v902_v44 = vmax.f32 %v796_v40, 0.0 }
 0x1d9   : > { %v900_v46 = vmax.f32 %v788_v42, 0.0 }
 0x1da   : > { %v930_v47 = vpack.c.bf16 %v902_v44, %v901_v43 }
 0x1db   : > { %v929_v48 = vpack.c.bf16 %v900_v46, %v899_v45  ;;  %v1472_v49 = vpop.f32.mrb[24].mxu1 }
 0x1dc   : > { %v809_v50 = vadd.f32 %v1472_v49, %v1909_v8  ;;  %v800_v51 = vpop.f32.mrb[25].mxu1 }
 0x1dd   : > { %v801_v52 = vadd.f32 %v1909_v8, %v800_v51  ;;  %v1473_v53 = vpop.f32.mrb[26].mxu1  ;;  %1514 = vmatprep.mubr.bf16.mxu0 %v929_v48 }
 0x1de   : > { %v812_v54 = vadd.f32 %v1473_v53, %v1909_v8  ;;  %v803_v55 = vpop.f32.mrb[27].mxu1  ;;  %1515 = vmatmul.mubr.bf16.gmra.mrb[20].mxu0 %v930_v47  ;;  %v905_v57 = vmax.f32 %v809_v50, 0.0 }
 0x1df   : > { %v804_v56 = vadd.f32 %v1909_v8, %v803_v55  ;;  %v903_v59 = vmax.f32 %v801_v52, 0.0 }
 0x1e0   : > { %v906_v58 = vmax.f32 %v812_v54, 0.0 }
 0x1e1   : > { %v904_v60 = vmax.f32 %v804_v56, 0.0 }
 0x1e2   : > { %v932_v61 = vpack.c.bf16 %v906_v58, %v905_v57 }
 0x1e3   : > { %v931_v62 = vpack.c.bf16 %v904_v60, %v903_v59  ;;  %v1476_v63 = vpop.f32.mrb[28].mxu1 }
 0x1e4   : > { %v825_v0 = vadd.f32 %v1476_v63, %v1909_v8  ;;  %v816_v1 = vpop.f32.mrb[29].mxu1 }
 0x1e5   : > { %v817_v2 = vadd.f32 %v1909_v8, %v816_v1  ;;  %v1477_v3 = vpop.f32.mrb[30].mxu1  ;;  %1518 = vmatprep.mubr.bf16.mxu0 %v931_v62 }
 0x1e6   : > { %v828_v4 = vadd.f32 %v1477_v3, %v1909_v8  ;;  %v819_v5 = vpop.f32.mrb[31].mxu1  ;;  %1519 = vmatmul.mubr.bf16.gmra.mrb[24].mxu0 %v932_v61  ;;  %v909_v7 = vmax.f32 %v825_v0, 0.0 }
 0x1e7   : > { %v820_v6 = vadd.f32 %v1909_v8, %v819_v5  ;;  %v907_v10 = vmax.f32 %v817_v2, 0.0 }
 0x1e8   : > { %v910_v9 = vmax.f32 %v828_v4, 0.0 }
 0x1e9   : > { %v908_v12 = vmax.f32 %v820_v6, 0.0  ;;  %v1949_v6 = vld [vmem:[%s2075_s6] ss:$0 sm:$0xff] }
 0x1ea   : > { %v934_v13 = vpack.c.bf16 %v910_v9, %v909_v7 }
 0x1eb   : > { %v933_v14 = vpack.c.bf16 %v908_v12, %v907_v10  ;;  %v1480_v15 = vpop.f32.mrb[32].mxu1 }
 0x1ec   : > { %v841_v16 = vadd.f32 %v1480_v15, %v1909_v8  ;;  %v832_v17 = vpop.f32.mrb[33].mxu1 }
 0x1ed   : > { %v833_v18 = vadd.f32 %v1909_v8, %v832_v17  ;;  %v1481_v19 = vpop.f32.mrb[34].mxu1  ;;  %1522 = vmatprep.mubr.bf16.mxu0 %v933_v14 }
 0x1ee   : > { %v844_v20 = vadd.f32 %v1481_v19, %v1909_v8  ;;  %v835_v32 = vpop.f32.mrb[35].mxu1  ;;  %1523 = vmatmul.mubr.bf16.gmra.mrb[28].mxu0 %v934_v13  ;;  %v913_v21 = vmax.f32 %v841_v16, 0.0 }
 0x1ef   : > { %v836_v11 = vadd.f32 %v1909_v8, %v835_v32  ;;  %v911_v23 = vmax.f32 %v833_v18, 0.0 }
 0x1f0   : > { %v914_v22 = vmax.f32 %v844_v20, 0.0 }
 0x1f1   : > { %v912_v24 = vmax.f32 %v836_v11, 0.0 }
 0x1f2   : > { %v936_v25 = vpack.c.bf16 %v914_v22, %v913_v21 }
 0x1f3   : > { %v935_v26 = vpack.c.bf16 %v912_v24, %v911_v23  ;;  %v1484_v27 = vpop.f32.mrb[36].mxu1 }
 0x1f4   : > { %v857_v28 = vadd.f32 %v1484_v27, %v1909_v8  ;;  %v848_v29 = vpop.f32.mrb[37].mxu1 }
 0x1f5   : > { %v849_v30 = vadd.f32 %v1909_v8, %v848_v29  ;;  %v1485_v31 = vpop.f32.mrb[38].mxu1  ;;  %1526 = vmatprep.mubr.bf16.mxu0 %v935_v26 }
 0x1f6   : > { %v860_v33 = vadd.f32 %v1485_v31, %v1909_v8  ;;  %v851_v34 = vpop.f32.mrb[39].mxu1  ;;  %1527 = vmatmul.mubr.bf16.gmra.mrb[32].mxu0 %v936_v25  ;;  %v917_v36 = vmax.f32 %v857_v28, 0.0 }
 0x1f7   : > { %v852_v35 = vadd.f32 %v1909_v8, %v851_v34  ;;  %v915_v38 = vmax.f32 %v849_v30, 0.0 }
 0x1f8   : > { %v918_v37 = vmax.f32 %v860_v33, 0.0 }
 0x1f9   : > { %v916_v39 = vmax.f32 %v852_v35, 0.0 }
 0x1fa   : > { %v938_v40 = vpack.c.bf16 %v918_v37, %v917_v36 }
 0x1fb   : > { %v937_v41 = vpack.c.bf16 %v916_v39, %v915_v38  ;;  %v1488_v42 = vpop.f32.mrb[40].mxu1 }
 0x1fc   : > { %v873_v43 = vadd.f32 %v1488_v42, %v1909_v8  ;;  %v864_v44 = vpop.f32.mrb[41].mxu1 }
 0x1fd   : > { %v865_v45 = vadd.f32 %v1909_v8, %v864_v44  ;;  %v1489_v46 = vpop.f32.mrb[42].mxu1  ;;  %1530 = vmatprep.mubr.bf16.mxu0 %v937_v41 }
 0x1fe   : > { %v876_v47 = vadd.f32 %v1489_v46, %v1909_v8  ;;  %v867_v48 = vpop.f32.mrb[43].mxu1  ;;  %1531 = vmatmul.mubr.bf16.gmra.mrb[36].mxu0 %v938_v40  ;;  %v921_v50 = vmax.f32 %v873_v43, 0.0 }
 0x1ff   : > { %v868_v49 = vadd.f32 %v1909_v8, %v867_v48  ;;  %v919_v52 = vmax.f32 %v865_v45, 0.0 }
 0x200   : > { %v922_v51 = vmax.f32 %v876_v47, 0.0 }
 0x201   : > { %v920_v53 = vmax.f32 %v868_v49, 0.0 }
 0x202   : > { %v940_v54 = vpack.c.bf16 %v922_v51, %v921_v50 }
 0x203   : > { %v939_v55 = vpack.c.bf16 %v920_v53, %v919_v52  ;;  %v1492_v56 = vpop.f32.mrb[44].mxu1 }
 0x204   : > { %v889_v57 = vadd.f32 %v1492_v56, %v1909_v8  ;;  %v880_v58 = vpop.f32.mrb[45].mxu1 }
 0x205   : > { %v881_v59 = vadd.f32 %v1909_v8, %v880_v58  ;;  %v1493_v60 = vpop.f32.mrb[46].mxu1  ;;  %1534 = vmatprep.mubr.bf16.mxu0 %v939_v55 }
 0x206   : > { %v892_v61 = vadd.f32 %v1493_v60, %v1909_v8  ;;  %v883_v62 = vpop.f32.mrb[47].mxu1  ;;  %1535 = vmatmul.mubr.bf16.gmra.mrb[40].mxu0 %v940_v54  ;;  %v925_v0 = vmax.f32 %v889_v57, 0.0 }
 0x207   : > { %v884_v63 = vadd.f32 %v1909_v8, %v883_v62  ;;  %v923_v2 = vmax.f32 %v881_v59, 0.0 }
 0x208   : > { %v926_v1 = vmax.f32 %v892_v61, 0.0 }
 0x209   : > { %v924_v3 = vmax.f32 %v884_v63, 0.0 }
 0x20a   : > { %v942_v4 = vpack.c.bf16 %v926_v1, %v925_v0 }
 0x20b   : > { %v941_v5 = vpack.c.bf16 %v924_v3, %v923_v2 }
 0x20d   : > { %1538 = vmatprep.mubr.bf16.mxu0 %v941_v5 }
 0x20e   : > { %1539 = vmatmul.mubr.bf16.gmra.mrb[44].mxu0 %v942_v4 }
 0x2a9   : > { %v1512_v7 = vpop.f32.mrb[16].mxu0 }
 0x2aa   : > { %v1057_v9 = vadd.f32 %v1512_v7, %v1949_v6  ;;  %v1048_v8 = vpop.f32.mrb[17].mxu0 }
 0x2ab   : > { %v1049_v10 = vadd.f32 %v1949_v6, %v1048_v8  ;;  %v1513_v12 = vpop.f32.mrb[18].mxu0 }
 0x2ac   : > { %1177 = vst [vmem:[%s1953_s18 + $0x10] sm:$0xff] %v1057_v9  ;;  %v1060_v13 = vadd.f32 %v1513_v12, %v1949_v6  ;;  %v1051_v14 = vpop.f32.mrb[19].mxu0 }
 0x2ad   : > { %1175 = vst [vmem:[%s1953_s18] sm:$0xff] %v1049_v10  ;;  %v1052_v15 = vadd.f32 %v1949_v6, %v1051_v14 }
 0x2ae   : > { %1178 = vst [vmem:[%s1953_s18 + $0x18] sm:$0xff] %v1060_v13 }
 0x2af   : > { %1176 = vst [vmem:[%s1953_s18 + $0x8] sm:$0xff] %v1052_v15 }
 0x2b1   : > { %v1516_v16 = vpop.f32.mrb[20].mxu0 }
 0x2b2   : > { %v1073_v17 = vadd.f32 %v1516_v16, %v1949_v6  ;;  %v1064_v18 = vpop.f32.mrb[21].mxu0 }
 0x2b3   : > { %v1065_v19 = vadd.f32 %v1949_v6, %v1064_v18  ;;  %v1517_v20 = vpop.f32.mrb[22].mxu0 }
 0x2b4   : > { %1181 = vst [vmem:[%s1953_s18 + $0x30] sm:$0xff] %v1073_v17  ;;  %v1076_v32 = vadd.f32 %v1517_v20, %v1949_v6  ;;  %v1067_v11 = vpop.f32.mrb[23].mxu0 }
 0x2b5   : > { %1179 = vst [vmem:[%s1953_s18 + $0x20] sm:$0xff] %v1065_v19  ;;  %v1068_v21 = vadd.f32 %v1949_v6, %v1067_v11 }
 0x2b6   : > { %1182 = vst [vmem:[%s1953_s18 + $0x38] sm:$0xff] %v1076_v32 }
 0x2b7   : > { %1180 = vst [vmem:[%s1953_s18 + $0x28] sm:$0xff] %v1068_v21 }
 0x2b9   : > { %v1520_v22 = vpop.f32.mrb[24].mxu0 }
 0x2ba   : > { %v1089_v23 = vadd.f32 %v1520_v22, %v1949_v6  ;;  %v1080_v24 = vpop.f32.mrb[25].mxu0 }
 0x2bb   : > { %v1081_v25 = vadd.f32 %v1949_v6, %v1080_v24  ;;  %v1521_v26 = vpop.f32.mrb[26].mxu0 }
 0x2bc   : > { %1185 = vst [vmem:[%s1953_s18 + $0x50] sm:$0xff] %v1089_v23  ;;  %v1092_v27 = vadd.f32 %v1521_v26, %v1949_v6  ;;  %v1083_v28 = vpop.f32.mrb[27].mxu0 }
 0x2bd   : > { %1183 = vst [vmem:[%s1953_s18 + $0x40] sm:$0xff] %v1081_v25  ;;  %v1084_v29 = vadd.f32 %v1949_v6, %v1083_v28 }
 0x2be   : > { %1186 = vst [vmem:[%s1953_s18 + $0x58] sm:$0xff] %v1092_v27 }
 0x2bf   : > { %1184 = vst [vmem:[%s1953_s18 + $0x48] sm:$0xff] %v1084_v29 }
 0x2c1   : > { %v1524_v30 = vpop.f32.mrb[28].mxu0 }
 0x2c2   : > { %v1105_v31 = vadd.f32 %v1524_v30, %v1949_v6  ;;  %v1096_v33 = vpop.f32.mrb[29].mxu0 }
 0x2c3   : > { %v1097_v34 = vadd.f32 %v1949_v6, %v1096_v33  ;;  %v1525_v35 = vpop.f32.mrb[30].mxu0 }
 0x2c4   : > { %1189 = vst [vmem:[%s1953_s18 + $0x70] sm:$0xff] %v1105_v31  ;;  %v1108_v36 = vadd.f32 %v1525_v35, %v1949_v6  ;;  %v1099_v37 = vpop.f32.mrb[31].mxu0 }
 0x2c5   : > { %1187 = vst [vmem:[%s1953_s18 + $0x60] sm:$0xff] %v1097_v34  ;;  %v1100_v38 = vadd.f32 %v1949_v6, %v1099_v37 }
 0x2c6   : > { %1190 = vst [vmem:[%s1953_s18 + $0x78] sm:$0xff] %v1108_v36 }
 0x2c7   : > { %1188 = vst [vmem:[%s1953_s18 + $0x68] sm:$0xff] %v1100_v38 }
 0x2c9   : > { %v1528_v39 = vpop.f32.mrb[32].mxu0 }
 0x2ca   : > { %v1121_v40 = vadd.f32 %v1528_v39, %v1949_v6  ;;  %v1112_v41 = vpop.f32.mrb[33].mxu0 }
 0x2cb   : > { %v1113_v42 = vadd.f32 %v1949_v6, %v1112_v41  ;;  %v1529_v43 = vpop.f32.mrb[34].mxu0 }
 0x2cc   : > { %1193 = vst [vmem:[%s1953_s18 + $0x90] sm:$0xff] %v1121_v40  ;;  %v1124_v44 = vadd.f32 %v1529_v43, %v1949_v6  ;;  %v1115_v45 = vpop.f32.mrb[35].mxu0 }
 0x2cd   : > { %1191 = vst [vmem:[%s1953_s18 + $0x80] sm:$0xff] %v1113_v42  ;;  %v1116_v46 = vadd.f32 %v1949_v6, %v1115_v45 }
 0x2ce   : > { %1194 = vst [vmem:[%s1953_s18 + $0x98] sm:$0xff] %v1124_v44 }
 0x2cf   : > { %1192 = vst [vmem:[%s1953_s18 + $0x88] sm:$0xff] %v1116_v46 }
 0x2d1   : > { %v1532_v47 = vpop.f32.mrb[36].mxu0 }
 0x2d2   : > { %v1137_v48 = vadd.f32 %v1532_v47, %v1949_v6  ;;  %v1128_v49 = vpop.f32.mrb[37].mxu0 }
 0x2d3   : > { %v1129_v50 = vadd.f32 %v1949_v6, %v1128_v49  ;;  %v1533_v51 = vpop.f32.mrb[38].mxu0 }
 0x2d4   : > { %1197 = vst [vmem:[%s1953_s18 + $0xb0] sm:$0xff] %v1137_v48  ;;  %v1140_v52 = vadd.f32 %v1533_v51, %v1949_v6  ;;  %v1131_v53 = vpop.f32.mrb[39].mxu0 }
 0x2d5   : > { %1195 = vst [vmem:[%s1953_s18 + $0xa0] sm:$0xff] %v1129_v50  ;;  %v1132_v54 = vadd.f32 %v1949_v6, %v1131_v53 }
 0x2d6   : > { %1198 = vst [vmem:[%s1953_s18 + $0xb8] sm:$0xff] %v1140_v52 }
 0x2d7   : > { %1196 = vst [vmem:[%s1953_s18 + $0xa8] sm:$0xff] %v1132_v54 }
 0x2d9   : > { %v1536_v55 = vpop.f32.mrb[40].mxu0 }
 0x2da   : > { %v1153_v56 = vadd.f32 %v1536_v55, %v1949_v6  ;;  %v1144_v57 = vpop.f32.mrb[41].mxu0 }
 0x2db   : > { %v1145_v58 = vadd.f32 %v1949_v6, %v1144_v57  ;;  %v1537_v59 = vpop.f32.mrb[42].mxu0 }
 0x2dc   : > { %1201 = vst [vmem:[%s1953_s18 + $0xd0] sm:$0xff] %v1153_v56  ;;  %v1156_v60 = vadd.f32 %v1537_v59, %v1949_v6  ;;  %v1147_v61 = vpop.f32.mrb[43].mxu0 }
 0x2dd   : > { %1199 = vst [vmem:[%s1953_s18 + $0xc0] sm:$0xff] %v1145_v58  ;;  %v1148_v62 = vadd.f32 %v1949_v6, %v1147_v61 }
 0x2de   : > { %1202 = vst [vmem:[%s1953_s18 + $0xd8] sm:$0xff] %v1156_v60 }
 0x2df   : > { %1200 = vst [vmem:[%s1953_s18 + $0xc8] sm:$0xff] %v1148_v62 }
 0x2e1   : > { %v1540_v63 = vpop.f32.mrb[44].mxu0 }
 0x2e2   : > { %v1169_v0 = vadd.f32 %v1540_v63, %v1949_v6  ;;  %v1160_v1 = vpop.f32.mrb[45].mxu0 }
 0x2e3   : > { %v1161_v2 = vadd.f32 %v1949_v6, %v1160_v1  ;;  %v1541_v3 = vpop.f32.mrb[46].mxu0 }
 0x2e4   : > { %1205 = vst [vmem:[%s1953_s18 + $0xf0] sm:$0xff] %v1169_v0  ;;  %v1172_v4 = vadd.f32 %v1541_v3, %v1949_v6  ;;  %v1163_v5 = vpop.f32.mrb[47].mxu0 }
 0x2e5   : > { %1203 = vst [vmem:[%s1953_s18 + $0xe0] sm:$0xff] %v1161_v2  ;;  %v1164_v7 = vadd.f32 %v1949_v6, %v1163_v5 }
 0x2e6   : > { %1206 = vst [vmem:[%s1953_s18 + $0xf8] sm:$0xff] %v1172_v4 }
 0x2e7   : > { %1204 = vst [vmem:[%s1953_s18 + $0xe8] sm:$0xff] %v1164_v7 }
 0x2e8   : > { %1632 = shalt.err (!%p1629_p3)
}
 0x2e9   : > { %s1633_s14 = scalar_lea.hbm %s2018_s29, 4096  ;;  %s1637_s17 = scalar_lea.hbm %s2076_s7, 8192 }
 0x2ea   : > { %p1634_p4 = scmp.ne.s32.totalorder %s2018_s29, %s1633_s14  ;;  %p1638_p9 = scmp.lt.u32.totalorder %s2018_s29, %s2076_s7 }
 0x2eb   : > { %p1639_p10 = scmp.lt.u32.totalorder %s1637_s17, %s1633_s14  ;;  %p1641_p12 = scmp.lt.u32.totalorder %s1633_s14, %s2018_s29 }
 0x2ec   : > { %p1635_p7 = pnand %p1634_p4, %p1764_p5 }
 0x2ed   : > { %p1640_p11 = por %p1639_p10, %p1638_p9 }
 0x2ee   : > { %p1636_p8 = pneg %p1635_p7 }
 0x2ef   : > { %p1642_p13 = por %p1641_p12, %p1640_p11 }
 0x2f1   : > { %p1643_p0 = pnand %p1642_p13, %p1636_p8 }
 0x2f3   : > { %1646 = shalt.err (!%p1643_p0)
}
 0x2f4   : > { %s1684_s22 = smov 128   ;;  %s1685_s23 = smov 8  }
 0x2f5   : > { %1546 = dma.vmem_to_hbm [thread:$0]  (%p1764_p5), %s2020_s20, 4096, %s2018_s29, %s2028_s28, %s1684_s22, %s1684_s22, %s1685_s23  }
 0x2f6 PF: > { %p1552_p1 = scmp.ge.s32.totalorder %s1681_s27, 2  ;;  %s1236_s21 = sand.u32 1, %s1669_s24  }
 0x2f7   : > { %s1237_s8 = scalar_lea.sflag [#allocation3], %s1236_s21 }
 0x2f8   : > { %p1549_p2 = pnand %p1552_p1, %p1768_p6 }
 0x2fa   : > { %1664 = dma.done.wait (!%p1549_p2), %s1237_s8, 4096  }
 0x2fb   : > { %1666 = vsyncadd (!%p1549_p2), %s1237_s8, 4294963200  ;;  %p17_p3 = scmp.ge.s32.totalorder %s1751_s30, 4   ;;  %s2079_s24 = smov %s1673_s25 }
 0x2fc   : > { %s2080_s25 = smov %s1677_s26  ;;  %s2081_s26 = smov %s1762_s10 }
 0x2fd   : > { %s2082_s27 = smov %s1751_s30  ;;  %19 = sbr.rel (!%p17_p3) target bundleno = 3 (0x3), region = 83 }
 0x304   :  { %1242 = vsyncpa [#allocation3], 1 }
 0x305   :  { %1244 = vsyncpa [#allocation3 + $0x1], 1 }

</bundles_post_ra>
